<compile_context>
chip_gen: v7x
topology: tpu7x:2x2x1
jax: 0.10.0
libtpu: 0.0.40
codegen_flags: <defaults>
</compile_context>

<pallas_src>
import functools

import jax
import jax.numpy as jnp
from jax.experimental import pallas as pl
from jax.experimental.pallas import tpu as pltpu

EPS = 1e-5


def _round_up(x, m):
    return (x + m - 1) // m * m


def _vmem_budget():
    try:
        vmem_cap = pltpu.get_tpu_info().vmem_capacity_bytes
    except Exception:
        vmem_cap = 64 * 1024 * 1024  # v7x (smallest VMEM) as conservative default
    vmem_limit = min(int(vmem_cap * 0.75), 100 * 1024 * 1024)
    budget = int(vmem_limit * 0.85)  # headroom for Mosaic internal scratch
    return vmem_limit, budget


def _legal_channel_tiles(C):
    """Channel tile sizes legal as the sublane dim of a (.., tc, lanes) block:
    multiple-of-8 divisors of C, plus the full-C extent (always legal)."""
    tiles = {C}
    for t in range(8, C, 8):
        if C % t == 0:
            tiles.add(t)
    return sorted(tiles, reverse=True)


def _pick_fused_tc(viable, C, tile_bytes):
    """Prefer >= 8 (then 4, 2) grid steps so the pipeline has work to overlap
    and both v7x TensorCores are busy, while keeping tiles >= ~1 MiB."""
    min_tile = 1 << 20
    for steps in (8, 4, 2):
        cands = [t for t in viable if C // t >= steps and tile_bytes(t) >= min_tile]
        if cands:
            return max(cands)
    for steps in (8, 4, 2):
        cands = [t for t in viable if C // t >= steps]
        if cands:
            return max(cands)
    return max(viable)


# ----------------------------------------------------------------------------
# Fused single-pass kernel: full reduction axis resident per channel group.
# ----------------------------------------------------------------------------
def _bn_relu_fused_kernel(x_ref, gamma_ref, beta_ref, o_ref, *, inv_count):
    n, tc, hw = x_ref.shape
    unroll = bool(n <= 8)

    # Single-pass stats (sum, sum of squares) accumulated in f32 slab-by-slab
    # over N: no full-tile f32 temp is ever materialized.
    def stats_body(i, carry):
        acc, acc2 = carry
        xi = x_ref[i].astype(jnp.float32)            # (tc, hw)
        return acc + xi, acc2 + xi * xi

    zeros = jnp.zeros((tc, hw), jnp.float32)
    acc, acc2 = jax.lax.fori_loop(0, n, stats_body, (zeros, zeros), unroll=unroll)

    mean = jnp.sum(acc, axis=-1, keepdims=True) * inv_count      # (tc, 1)
    ex2 = jnp.sum(acc2, axis=-1, keepdims=True) * inv_count      # (tc, 1)
    var = jnp.maximum(ex2 - mean * mean, 0.0)                    # biased variance
    inv_std = jax.lax.rsqrt(var + EPS)

    # Fold affine into per-channel scale/shift: y = max(x*scale + shift, 0).
    scale = gamma_ref[0] * inv_std                               # (tc, 1) f32
    shift = beta_ref[0] - mean * scale                           # (tc, 1) f32
    sc = scale.astype(x_ref.dtype)
    sh = shift.astype(x_ref.dtype)

    # Normalize + ReLU in the native dtype, slab-by-slab (mul + add + max).
    def norm_body(i, carry):
        o_ref[i] = jnp.maximum(x_ref[i] * sc + sh, 0).astype(o_ref.dtype)
        return carry

    jax.lax.fori_loop(0, n, norm_body, 0, unroll=unroll)


# ----------------------------------------------------------------------------
# Two-sweep fallback: sweep 1 = per-channel sum / sumsq over spatial chunks.
# ----------------------------------------------------------------------------
def _bn_stats_kernel(x_ref, sum_ref, sq_ref, acc_sum, acc_sq):
    s_idx = pl.program_id(1)

    @pl.when(s_idx == 0)
    def _():
        acc_sum[...] = jnp.zeros_like(acc_sum)
        acc_sq[...] = jnp.zeros_like(acc_sq)

    n, tc, ts = x_ref.shape

    def body(i, carry):
        a, a2 = carry
        xi = x_ref[i].astype(jnp.float32)            # (tc, ts)
        return a + xi, a2 + xi * xi

    zeros = jnp.zeros((tc, ts), jnp.float32)
    a, a2 = jax.lax.fori_loop(0, n, body, (zeros, zeros), unroll=bool(n <= 8))
    acc_sum[...] += jnp.sum(a, axis=-1, keepdims=True)
    acc_sq[...] += jnp.sum(a2, axis=-1, keepdims=True)

    @pl.when(s_idx == pl.num_programs(1) - 1)
    def _():
        sum_ref[...] = acc_sum[...]
        sq_ref[...] = acc_sq[...]


# Sweep 2 = elementwise normalize + ReLU with precomputed per-channel scale/shift.
def _bn_norm_relu_kernel(x_ref, scale_ref, shift_ref, o_ref):
    n = x_ref.shape[0]
    sc = scale_ref[0].astype(x_ref.dtype)            # (tc, 1)
    sh = shift_ref[0].astype(x_ref.dtype)

    def body(i, carry):
        o_ref[i] = jnp.maximum(x_ref[i] * sc + sh, 0).astype(o_ref.dtype)
        return carry

    jax.lax.fori_loop(0, n, body, 0, unroll=bool(n <= 8))


def _two_sweep(x3, g, b, inv_count, itemsize, budget, vmem_limit):
    N, C, HWp = x3.shape
    out_dtype = x3.dtype

    def step_bytes(tc, ts):
        # double-buffered in + out blocks plus a few f32 slab temps
        return 4 * N * tc * ts * itemsize + 8 * tc * ts * 4

    tcs = _legal_channel_tiles(C)
    tc_fit = [t for t in tcs if step_bytes(t, min(128, HWp)) <= budget]
    tc = max(tc_fit) if tc_fit else min(tcs)
    # TODO(synk): also tile N when even the minimal (N, tc, 128) block overflows
    # VMEM (extremely large batch); needs a second "arbitrary" grid axis.

    s_units = max(HWp // 128, 1)
    ts_divs = [128 * k for k in range(1, s_units + 1) if s_units % k == 0] or [HWp]
    ts_fit = [t for t in ts_divs if step_bytes(tc, t) <= budget]
    ts_multi = [t for t in ts_fit if HWp // t >= 4]      # keep the pipeline fed
    ts = max(ts_multi or ts_fit or [min(128, HWp)])

    grid = (C // tc, HWp // ts)

    sums, sqs = pl.pallas_call(
        _bn_stats_kernel,
        out_shape=(jax.ShapeDtypeStruct((C, 1), jnp.float32),
                   jax.ShapeDtypeStruct((C, 1), jnp.float32)),
        grid_spec=pl.GridSpec(
            grid=grid,
            in_specs=[pl.BlockSpec((N, tc, ts), lambda c, s: (0, c, s))],
            out_specs=(pl.BlockSpec((tc, 1), lambda c, s: (c, 0)),
                       pl.BlockSpec((tc, 1), lambda c, s: (c, 0))),
            scratch_shapes=[pltpu.VMEM((tc, 1), jnp.float32),
                            pltpu.VMEM((tc, 1), jnp.float32)],
        ),
        compiler_params=pltpu.CompilerParams(
            dimension_semantics=("parallel", "arbitrary"),
            vmem_limit_bytes=vmem_limit,
        ),
    )(x3)

    # Per-channel scale/shift (C scalars) — trivial work, done in plain JAX.
    mean = sums * inv_count
    var = jnp.maximum(sqs * inv_count - mean * mean, 0.0)
    inv_std = jax.lax.rsqrt(var + EPS)
    gc = g.reshape(C, 1)
    bc = b.reshape(C, 1)
    scale = (gc * inv_std).reshape(1, C, 1)
    shift = (bc - mean * gc * inv_std).reshape(1, C, 1)

    return pl.pallas_call(
        _bn_norm_relu_kernel,
        out_shape=jax.ShapeDtypeStruct((N, C, HWp), out_dtype),
        grid_spec=pl.GridSpec(
            grid=grid,
            in_specs=[pl.BlockSpec((N, tc, ts), lambda c, s: (0, c, s)),
                      pl.BlockSpec((1, tc, 1), lambda c, s: (0, c, 0)),
                      pl.BlockSpec((1, tc, 1), lambda c, s: (0, c, 0))],
            out_specs=pl.BlockSpec((N, tc, ts), lambda c, s: (0, c, s)),
        ),
        compiler_params=pltpu.CompilerParams(
            dimension_semantics=("parallel", "parallel"),
            vmem_limit_bytes=vmem_limit,
        ),
    )(x3, scale, shift)


# ----------------------------------------------------------------------------
# Public wrapper.
# ----------------------------------------------------------------------------
def batchnorm_relu(x_nchw, gamma, beta):
    """Training-mode BatchNorm2d (biased batch stats, eps=1e-5, affine) + ReLU.

    x_nchw: (N, C, H, W); gamma, beta: (C,). Returns (N, C, H, W).
    """
    N, C, H, W = x_nchw.shape
    HW = H * W
    itemsize = jnp.dtype(x_nchw.dtype).itemsize
    out_dtype = x_nchw.dtype

    # Lane-dense last dim: pad HW up to a multiple of 128 when needed.  The
    # zero pad is excluded from the statistics via the true-count denominator
    # and sliced off at the end; no-op (and no extra HBM traffic) when aligned.
    HWp = _round_up(HW, 128)
    x3 = x_nchw.reshape(N, C, HW)
    if HWp != HW:
        x3 = jnp.pad(x3, ((0, 0), (0, 0), (0, HWp - HW)))

    g = gamma.reshape(1, C, 1).astype(jnp.float32)
    b = beta.reshape(1, C, 1).astype(jnp.float32)
    inv_count = 1.0 / float(N * HW)

    vmem_limit, budget = _vmem_budget()

    # Fused path viability: double-buffered in/out blocks + f32 slab temps.
    tcs = _legal_channel_tiles(C)
    per_ch = 4 * N * HWp * itemsize + 32 * HWp
    fused_viable = [t for t in tcs if t * per_ch <= budget]

    if fused_viable:
        tc = _pick_fused_tc(fused_viable, C, lambda t: N * t * HWp * itemsize)
        kernel = functools.partial(_bn_relu_fused_kernel, inv_count=inv_count)
        out3 = pl.pallas_call(
            kernel,
            out_shape=jax.ShapeDtypeStruct((N, C, HWp), out_dtype),
            grid_spec=pl.GridSpec(
                grid=(C // tc,),
                in_specs=[pl.BlockSpec((N, tc, HWp), lambda c: (0, c, 0)),
                          pl.BlockSpec((1, tc, 1), lambda c: (0, c, 0)),
                          pl.BlockSpec((1, tc, 1), lambda c: (0, c, 0))],
                out_specs=pl.BlockSpec((N, tc, HWp), lambda c: (0, c, 0)),
            ),
            compiler_params=pltpu.CompilerParams(
                dimension_semantics=("parallel",),
                vmem_limit_bytes=vmem_limit,
            ),
        )(x3, g, b)
    else:
        out3 = _two_sweep(x3, g, b, inv_count, itemsize, budget, vmem_limit)

    if HWp != HW:
        out3 = out3[:, :, :HW]
    return out3.reshape(N, C, H, W)


if __name__ == "__main__":
    key = jax.random.PRNGKey(0)
    N, C, H, W = 2, 4, 16, 16
    x = jax.random.normal(key, (N, C, H, W), dtype=jnp.float32)

    # nn.BatchNorm2d default affine init.
    gamma = jnp.ones((C,), dtype=jnp.float32)
    beta = jnp.zeros((C,), dtype=jnp.float32)

    # TODO(synk): PyTorch training-mode BatchNorm2d also updates
    # running_mean/running_var (unbiased variance); this kernel produces only
    # the forward output (batch-stat normalization + ReLU).

    out = jax.block_until_ready(batchnorm_relu(x, gamma, beta))

    # sanity check vs. pure-JAX reference
    mean = jnp.mean(x, axis=(0, 2, 3), keepdims=True)
    var = jnp.mean((x - mean) ** 2, axis=(0, 2, 3), keepdims=True)
    ref = jnp.maximum((x - mean) / jnp.sqrt(var + EPS) * gamma.reshape(1, C, 1, 1)
                      + beta.reshape(1, C, 1, 1), 0.0)
    assert out.shape == (N, C, H, W)
    assert jnp.max(jnp.abs(out - ref)) < 1e-4, float(jnp.max(jnp.abs(out - ref)))

    print("KERNEL_OK")
</pallas_src>

<mosaic_0001>
module attributes {stable_mosaic.version = 11 : i64} {
  func.func @_bn_relu_fused_kernel(%arg0: i32, %arg1: memref<2x4x256xf32, #tpu.memory_space<vmem>>, %arg2: memref<1x4x1xf32, #tpu.memory_space<vmem>>, %arg3: memref<1x4x1xf32, #tpu.memory_space<vmem>>, %arg4: memref<2x4x256xf32, #tpu.memory_space<vmem>>) attributes {dimension_semantics = [#tpu.dimension_semantics<parallel>], iteration_bounds = array<i64: 1>, scalar_prefetch = 0 : i64, scratch_operands = 0 : i64, tpu.core_type = #tpu.core_type<tc>, window_params = [{transform_indices = @transform_0, window_bounds = array<i64: 2, 4, 256>}, {transform_indices = @transform_1, window_bounds = array<i64: 1, 4, 1>}, {transform_indices = @transform_2, window_bounds = array<i64: 1, 4, 1>}, {transform_indices = @transform_3, window_bounds = array<i64: 2, 4, 256>}]} {
    %cst = arith.constant 0.000000e+00 : f32
    %0 = vector.broadcast %cst : f32 to vector<4x256xf32>
    %c0_i32 = arith.constant 0 : i32
    %1 = arith.index_cast %c0_i32 : i32 to index
    %c0 = arith.constant 0 : index
    %c0_0 = arith.constant 0 : index
    %2 = vector.load %arg1[%1, %c0, %c0_0] : memref<2x4x256xf32, #tpu.memory_space<vmem>>, vector<1x4x256xf32>
    %3 = vector.shape_cast %2 : vector<1x4x256xf32> to vector<4x256xf32>
    %4 = arith.addf %0, %3 : vector<4x256xf32>
    %5 = arith.mulf %3, %3 : vector<4x256xf32>
    %6 = arith.addf %0, %5 : vector<4x256xf32>
    %c1_i32 = arith.constant 1 : i32
    %7 = arith.index_cast %c1_i32 : i32 to index
    %c0_1 = arith.constant 0 : index
    %c0_2 = arith.constant 0 : index
    %8 = vector.load %arg1[%7, %c0_1, %c0_2] : memref<2x4x256xf32, #tpu.memory_space<vmem>>, vector<1x4x256xf32>
    %9 = vector.shape_cast %8 : vector<1x4x256xf32> to vector<4x256xf32>
    %10 = arith.addf %4, %9 : vector<4x256xf32>
    %11 = arith.mulf %9, %9 : vector<4x256xf32>
    %12 = arith.addf %6, %11 : vector<4x256xf32>
    %c2_i32 = arith.constant 2 : i32
    %cst_3 = arith.constant dense<0.000000e+00> : vector<4xf32>
    %13 = vector.multi_reduction <add>, %10, %cst_3 [1] : vector<4x256xf32> to vector<4xf32>
    %14 = vector.shape_cast %13 : vector<4xf32> to vector<4x1xf32>
    %cst_4 = arith.constant 0.001953125 : f32
    %15 = vector.broadcast %cst_4 : f32 to vector<4x1xf32>
    %16 = arith.mulf %14, %15 : vector<4x1xf32>
    %cst_5 = arith.constant dense<0.000000e+00> : vector<4xf32>
    %17 = vector.multi_reduction <add>, %12, %cst_5 [1] : vector<4x256xf32> to vector<4xf32>
    %18 = vector.shape_cast %17 : vector<4xf32> to vector<4x1xf32>
    %cst_6 = arith.constant 0.001953125 : f32
    %19 = vector.broadcast %cst_6 : f32 to vector<4x1xf32>
    %20 = arith.mulf %18, %19 : vector<4x1xf32>
    %21 = arith.mulf %16, %16 : vector<4x1xf32>
    %22 = arith.subf %20, %21 : vector<4x1xf32>
    %cst_7 = arith.constant 0.000000e+00 : f32
    %23 = vector.broadcast %cst_7 : f32 to vector<4x1xf32>
    %24 = arith.maximumf %22, %23 : vector<4x1xf32>
    %cst_8 = arith.constant 9.99999974E-6 : f32
    %25 = vector.broadcast %cst_8 : f32 to vector<4x1xf32>
    %26 = arith.addf %24, %25 : vector<4x1xf32>
    %27 = math.rsqrt %26 : vector<4x1xf32>
    %c0_9 = arith.constant 0 : index
    %c0_10 = arith.constant 0 : index
    %c0_11 = arith.constant 0 : index
    %28 = vector.load %arg2[%c0_9, %c0_10, %c0_11] : memref<1x4x1xf32, #tpu.memory_space<vmem>>, vector<1x4x1xf32>
    %29 = vector.shape_cast %28 : vector<1x4x1xf32> to vector<4x1xf32>
    %30 = arith.mulf %29, %27 : vector<4x1xf32>
    %c0_12 = arith.constant 0 : index
    %c0_13 = arith.constant 0 : index
    %c0_14 = arith.constant 0 : index
    %31 = vector.load %arg3[%c0_12, %c0_13, %c0_14] : memref<1x4x1xf32, #tpu.memory_space<vmem>>, vector<1x4x1xf32>
    %32 = vector.shape_cast %31 : vector<1x4x1xf32> to vector<4x1xf32>
    %33 = arith.mulf %16, %30 : vector<4x1xf32>
    %34 = arith.subf %32, %33 : vector<4x1xf32>
    %c0_i32_15 = arith.constant 0 : i32
    %35 = arith.index_cast %c0_i32_15 : i32 to index
    %c0_16 = arith.constant 0 : index
    %c0_17 = arith.constant 0 : index
    %36 = vector.load %arg1[%35, %c0_16, %c0_17] : memref<2x4x256xf32, #tpu.memory_space<vmem>>, vector<1x4x256xf32>
    %37 = vector.shape_cast %36 : vector<1x4x256xf32> to vector<4x256xf32>
    %38 = vector.broadcast %30 : vector<4x1xf32> to vector<4x256xf32>
    %39 = arith.mulf %37, %38 : vector<4x256xf32>
    %40 = vector.broadcast %34 : vector<4x1xf32> to vector<4x256xf32>
    %41 = arith.addf %39, %40 : vector<4x256xf32>
    %cst_18 = arith.constant 0.000000e+00 : f32
    %42 = vector.broadcast %cst_18 : f32 to vector<4x256xf32>
    %43 = arith.maximumf %41, %42 : vector<4x256xf32>
    %44 = arith.index_cast %c0_i32_15 : i32 to index
    %c0_19 = arith.constant 0 : index
    %c0_20 = arith.constant 0 : index
    %45 = vector.load %arg4[%44, %c0_19, %c0_20] : memref<2x4x256xf32, #tpu.memory_space<vmem>>, vector<1x4x256xf32>
    %46 = vector.shape_cast %45 : vector<1x4x256xf32> to vector<4x256xf32>
    %47 = vector.shape_cast %43 : vector<4x256xf32> to vector<1x4x256xf32>
    tpu.vector_store %arg4[%44, %c0_19, %c0_20], %47 {strides = array<i32>} : memref<2x4x256xf32, #tpu.memory_space<vmem>>, vector<1x4x256xf32>,
    %c1_i32_21 = arith.constant 1 : i32
    %48 = arith.index_cast %c1_i32_21 : i32 to index
    %c0_22 = arith.constant 0 : index
    %c0_23 = arith.constant 0 : index
    %49 = vector.load %arg1[%48, %c0_22, %c0_23] : memref<2x4x256xf32, #tpu.memory_space<vmem>>, vector<1x4x256xf32>
    %50 = vector.shape_cast %49 : vector<1x4x256xf32> to vector<4x256xf32>
    %51 = vector.broadcast %30 : vector<4x1xf32> to vector<4x256xf32>
    %52 = arith.mulf %50, %51 : vector<4x256xf32>
    %53 = vector.broadcast %34 : vector<4x1xf32> to vector<4x256xf32>
    %54 = arith.addf %52, %53 : vector<4x256xf32>
    %cst_24 = arith.constant 0.000000e+00 : f32
    %55 = vector.broadcast %cst_24 : f32 to vector<4x256xf32>
    %56 = arith.maximumf %54, %55 : vector<4x256xf32>
    %57 = arith.index_cast %c1_i32_21 : i32 to index
    %c0_25 = arith.constant 0 : index
    %c0_26 = arith.constant 0 : index
    %58 = vector.load %arg4[%57, %c0_25, %c0_26] : memref<2x4x256xf32, #tpu.memory_space<vmem>>, vector<1x4x256xf32>
    %59 = vector.shape_cast %58 : vector<1x4x256xf32> to vector<4x256xf32>
    %60 = vector.shape_cast %56 : vector<4x256xf32> to vector<1x4x256xf32>
    tpu.vector_store %arg4[%57, %c0_25, %c0_26], %60 {strides = array<i32>} : memref<2x4x256xf32, #tpu.memory_space<vmem>>, vector<1x4x256xf32>,
    %c2_i32_27 = arith.constant 2 : i32
    return
  }
  func.func @transform_0(%arg0: i32) -> (i32, i32, i32) {
    %c0_i32 = arith.constant 0 : i32
    %c0_i32_0 = arith.constant 0 : i32
    %c0_i32_1 = arith.constant 0 : i32
    return %c0_i32, %arg0, %c0_i32_0 : i32, i32, i32
  }
  func.func @transform_1(%arg0: i32) -> (i32, i32, i32) {
    %c0_i32 = arith.constant 0 : i32
    %c0_i32_0 = arith.constant 0 : i32
    %c0_i32_1 = arith.constant 0 : i32
    return %c0_i32, %arg0, %c0_i32_0 : i32, i32, i32
  }
  func.func @transform_2(%arg0: i32) -> (i32, i32, i32) {
    %c0_i32 = arith.constant 0 : i32
    %c0_i32_0 = arith.constant 0 : i32
    %c0_i32_1 = arith.constant 0 : i32
    return %c0_i32, %arg0, %c0_i32_0 : i32, i32, i32
  }
  func.func @transform_3(%arg0: i32) -> (i32, i32, i32) {
    %c0_i32 = arith.constant 0 : i32
    %c0_i32_0 = arith.constant 0 : i32
    %c0_i32_1 = arith.constant 0 : i32
    return %c0_i32, %arg0, %c0_i32_0 : i32, i32, i32
  }
}

</mosaic_0001>

<bundles_post_ra>
// kernel: tpu_custom_call.1
= control target key start
LH: loop header
LB: loop body
LE: loop exit
PB: predicated region body
PF: predicated region fallthrough
CT: control target
= control target key end

     0   :  { %8 = vsyncpa [#allocation3], 0  ;;  %s238_s0 = inlined_call_operand.hbm [shape: f32[2,4,256], index: 0, kind: input, shape index: {}]   ;;  %s239_s1 = inlined_call_operand.vmem [shape: f32[1,4,1], index: 1, kind: input, shape index: {}]   ;;  %s240_s2 = inlined_call_operand.vmem [shape: f32[1,4,1], index: 2, kind: input, shape index: {}]   ;;  %s241_s3 = inlined_call_operand.hbm [shape: f32[2,4,256], index: 3, kind: output, shape index: {}]  }
   0x1   :  { %9 = vsyncpa [#allocation4], 0  ;;  %s176_s12 = smov [#allocation2]   ;;  %s128_s16 = scalar_lea.hbm %s238_s0, 256 }
   0x2   :  { %s15_s13 = sshll.u32 %s176_s12, 4  ;;  %p129_p0 = scmp.ne.s32.totalorder %s238_s0, %s128_s16  ;;  %s16_s13 = int_to_ptr.vmem [resolvable:$true] %s15_s13 }
   0x3   :  { %p132_p1 = scmp.lt.u32.totalorder %s128_s16, %s238_s0 }
   0x5   :  { %p134_p2 = pnand %p132_p1, %p129_p0 }
   0x7   :  { %137 = shalt.err (!%p134_p2)
}
   0x8   :  { %s138_s21 = scalar_lea.vmem %s16_s13, 256  ;;  %p143_p4 = scmp.lt.s32.totalorder %s16_s13, %s16_s13 }
   0x9   :  { %p139_p3 = scmp.ne.s32.totalorder %s16_s13, %s138_s21  ;;  %p144_p5 = scmp.lt.s32.totalorder %s138_s21, %s138_s21 }
   0xb   :  { %p145_p6 = por %p144_p5, %p143_p4 }
   0xd   :  { %p146_p7 = pnand %p145_p6, %p139_p3 }
   0xf   :  { %149 = shalt.err (!%p146_p7)
}
  0x10   :  { %s177_s22 = smov 128   ;;  %s178_s23 = smov 8  }
  0x11   :  { %21 = dma.hbm_to_vmem [thread:$0]  %s238_s0, 256, %s16_s13, [#allocation3], %s177_s22, %s177_s22, %s178_s23  }
  0x12   :  { %172 = dma.done.wait [#allocation3], 256  }
  0x13   :  { %173 = vsyncadd [#allocation3], 4294967040  ;;  %v29_v0 = vld [vmem:[#allocation2] sm:$0xff]  ;;  %v34_v1 = vld [vmem:[#allocation2 + $0x8] sm:$0xff]  ;;  %vm41_vm0 = vcmask 1043456   ;;  %v179_v14 = vmov 0   ;;  %v74_v31 = vlaneseq }
  0x14   :  { %v35_v2 = vadd.f32 %v34_v1, %v29_v0  ;;  %v36_v3 = vmul.f32 %v34_v1, %v34_v1  ;;  %v31_v4 = vmul.f32 %v29_v0, %v29_v0  ;;  %124 = vset.pattern.permute.xlu1 %v179_v14  ;;  %125 = vset.pattern.permute.xlu0 %v179_v14  ;;  %v62_v23 = vld [vmem:[%s239_s1] sm:$0xf]  ;;  %v180_v29 = vmov 839922192   ;;  %s181_s1 = smov [#allocation5]  }
  0x15   :  { %v64_v26 = vld [vmem:[%s240_s2] sm:$0xf]  ;;  %v72_v30 = vunpack.c.l.s4 %v180_v29  ;;  %v75_v33 = vshrl.u32 %v74_v31, 7  ;;  %s106_s29 = sshll.u32 %s181_s1, 4  ;;  %s107_s29 = int_to_ptr.vmem [resolvable:$true] %s106_s29 }
  0x16   :  { %v39_v5 = vcombine.high %v35_v2, %v35_v2  ;;  %v42_v6 = vsel %vm41_vm0, %v35_v2, 0.0  ;;  %v37_v7 = vadd.f32 %v36_v3, %v31_v4  ;;  %s150_s2 = scalar_lea.vmem %s107_s29, 256  ;;  %p155_p9 = scmp.lt.s32.totalorder %s107_s29, %s107_s29 }
  0x17   :  { %v73_v32 = vunpack.c.0.s8 %v72_v30  ;;  %p151_p8 = scmp.ne.s32.totalorder %s107_s29, %s150_s2  ;;  %p156_p10 = scmp.lt.s32.totalorder %s150_s2, %s150_s2 }
  0x18   :  { %v43_v8 = vsel %vm41_vm0, %v39_v5, 0.0  ;;  %v49_v9 = vcombine.high %v37_v7, %v37_v7  ;;  %v51_v10 = vsel %vm41_vm0, %v37_v7, 0.0 }
  0x19   :  { %v44_v11 = vadd.f32 %v43_v8, %v42_v6  ;;  %v76_v34 = vsub.s32 %v73_v32, %v75_v33  ;;  %p157_p11 = por %p156_p10, %p155_p9 }
  0x1a   :  { %v52_v12 = vsel %vm41_vm0, %v49_v9, 0.0 }
  0x1b   :  { %45 = vadd.xlane.f32.xlu0 %v44_v11  ;;  %v53_v13 = vadd.f32 %v52_v12, %v51_v10  ;;  %p158_p12 = pnand %p157_p11, %p151_p8 }
  0x1f   :  { %54 = vadd.xlane.f32.xlu0 %v53_v13 }
  0xa8   :  { %v46_v15 = vpop.xlane.xlu0 %45 }
  0xa9   :  { %v47_v16 = vmul.f32 0.001953125, %v46_v15 }
  0xab   :  { %v57_v18 = vmul.f32 %v47_v16, %v47_v16 }
  0xac   :  { %v55_v17 = vpop.xlane.xlu0 %54 }
  0xad   :  { %v56_v19 = vmul.f32 0.001953125, %v55_v17 }
  0xaf   :  { %v58_v20 = vsub.f32 %v56_v19, %v57_v18 }
  0xb1   :  { %v59_v21 = vmax.f32 %v58_v20, 0.0 }
  0xb3   :  { %v60_v22 = vadd.f32 1e-05, %v59_v21 }
  0xb5   :  { %126 = vrsqrt.f32 %v60_v22 }
  0xbf   :  { %v127_v24 = vpop.eup %126 }
  0xc0   :  { %v63_v25 = vmul.f32 %v127_v24, %v62_v23 }
  0xc2   :  { %69 = vperm.xlu1 %124, %v63_v25   ;;  %v65_v27 = vmul.f32 %v63_v25, %v47_v16 }
  0xc4   :  { %v66_v28 = vsub.f32 %v64_v26, %v65_v27 }
  0xc6   :  { %82 = vperm.xlu1 %124, %v66_v28  }
 0x141   :  { %v70_v35 = vpop.permute.xlu1 %69 }
 0x142   :  { %v77_v36 = vrot.slane %v70_v35, %v76_v34 }
 0x144   :  { %v79_v38 = vmul.f32 %v77_v36, %v29_v0  ;;  %v96_v39 = vmul.f32 %v77_v36, %v34_v1 }
 0x145   :  { %v83_v37 = vpop.permute.xlu1 %82 }
 0x146   :  { %v90_v40 = vrot.slane %v83_v37, %v76_v34 }
 0x148   :  { %v92_v41 = vadd.f32 %v90_v40, %v79_v38  ;;  %v97_v42 = vadd.f32 %v96_v39, %v90_v40 }
 0x14a   :  { %v93_v43 = vmax.f32 %v92_v41, 0.0  ;;  %v98_v44 = vmax.f32 %v97_v42, 0.0 }
 0x14c   :  { %94 = vst [vmem:[#allocation5] sm:$0xff] %v93_v43  ;;  %100 = vst [vmem:[#allocation5 + $0x8] sm:$0xff] %v98_v44 }
 0x14d   :  { %161 = shalt.err (!%p158_p12)
}
 0x14e   :  { %s162_s5 = scalar_lea.hbm %s241_s3, 256 }
 0x14f   :  { %p163_p13 = scmp.ne.s32.totalorder %s241_s3, %s162_s5  ;;  %p166_p0 = scmp.lt.u32.totalorder %s162_s5, %s241_s3 }
 0x151   :  { %p168_p1 = pnand %p166_p0, %p163_p13 }
 0x153   :  { %171 = shalt.err (!%p168_p1)
}
 0x154   :  { %112 = dma.vmem_to_hbm [thread:$0]  %s107_s29, 256, %s241_s3, [#allocation4], %s177_s22, %s177_s22, %s178_s23  }
 0x155   :  { %174 = dma.done.wait [#allocation4], 256  }
 0x156   :  { %175 = vsyncadd [#allocation4], 4294967040 }
 0x157   :  { %116 = vsyncpa [#allocation3], 1 }
 0x158   :  { %117 = vsyncpa [#allocation4], 1 }

</bundles_post_ra>
